<compile_context>
chip_gen: v7x
topology: tpu7x:2x2x1
jax: 0.10.0
libtpu: 0.0.40
codegen_flags: <defaults>
</compile_context>

<pallas_src>
import functools

import jax
import jax.numpy as jnp
from jax.experimental import pallas as pl
from jax.experimental.pallas import tpu as pltpu


def _round_up(x, m):
    return ((x + m - 1) // m) * m


# ----------------------------------------------------------------------------
# Kernel
# ----------------------------------------------------------------------------
def _critic_kernel(obs_ref, act_ref, wt_ref, tv_ref, w1h_ref, w1a_ref,
                   w2a_ref, w2b_ref, hv_ref, out_ref, acc_ref, *,
                   feature_dim, hidden_pad):
    f32 = jnp.float32
    bf16 = jnp.bfloat16
    HP = hidden_pad

    k = pl.program_id(1)
    nk = pl.num_programs(1)

    # ---- trunk matmul, K-tiled: accumulate pre-activation in f32 scratch ----
    @pl.when(k == 0)
    def _():
        acc_ref[...] = jnp.zeros_like(acc_ref)

    acc_ref[...] += jnp.dot(obs_ref[...], wt_ref[...],
                            preferred_element_type=f32)

    # ---- LayerNorm / Tanh / fused Q heads on the last K step only ----
    @pl.when(k == nk - 1)
    def _():
        h = acc_ref[...] + tv_ref[0:1, :]            # trunk bias (pad lanes = 0)
        # Masked LayerNorm stats: lanes >= feature_dim are exactly zero, so
        # sum/F and E[x^2]-mu^2 give the true-F mean / variance.
        inv_f = 1.0 / feature_dim
        mu = jnp.sum(h, axis=-1, keepdims=True) * inv_f
        var = jnp.sum(h * h, axis=-1, keepdims=True) * inv_f - mu * mu
        h = (h - mu) * jax.lax.rsqrt(var + 1e-5)
        h = h * tv_ref[1:2, :] + tv_ref[2:3, :]      # gamma/beta (padding = 0)
        h = jnp.tanh(h)

        # Fused Q1/Q2 layer 1: concat(h, a) @ W1 == h @ W1h + a @ W1a.
        x = (jnp.dot(h.astype(bf16), w1h_ref[...], preferred_element_type=f32)
             + jnp.dot(act_ref[...], w1a_ref[...], preferred_element_type=f32)
             + hv_ref[0:1, :])                       # (TB, 2*HP)
        x = jnp.maximum(x, 0.0)

        # Layer 2: two aligned (HP,HP) matmuls instead of a block-diag 2HPx2HP.
        x1 = jnp.dot(x[:, :HP].astype(bf16), w2a_ref[...],
                     preferred_element_type=f32) + hv_ref[1:2, :HP]
        x2 = jnp.dot(x[:, HP:].astype(bf16), w2b_ref[...],
                     preferred_element_type=f32) + hv_ref[1:2, HP:]
        x1 = jnp.maximum(x1, 0.0)
        x2 = jnp.maximum(x2, 0.0)

        # Final (hidden -> 1): VPU multiply + lane sum on aligned slices
        # (no N=1 MXU pushes, no iota/where masks - padded w3 lanes are zero).
        q1 = jnp.sum(x1 * hv_ref[2:3, :HP], axis=-1, keepdims=True) \
            + hv_ref[3:4, 0:1]
        q2 = jnp.sum(x2 * hv_ref[2:3, HP:], axis=-1, keepdims=True) \
            + hv_ref[3:4, 1:2]

        # Lane-dense (TB, 128) output tile: lane 0 = q1, lane 1 = q2.
        lane = jax.lax.broadcasted_iota(jnp.int32, out_ref.shape, 1)
        out_ref[...] = jnp.where(lane == 0, q1,
                                 jnp.where(lane == 1, q2, 0.0))


# ----------------------------------------------------------------------------
# Wrapper
# ----------------------------------------------------------------------------
def _choose_block_k(repr_dim, target):
    """Largest multiple of 128 that divides repr_dim and is <= target."""
    if repr_dim <= target or repr_dim % 128 != 0:
        # TODO(synk): production repr_dim (~39200) is not a 128-multiple; pad
        # obs columns / wt rows upstream to enable K-tiling on v7x (64 MiB).
        return repr_dim
    tk = (target // 128) * 128
    while tk >= 128:
        if repr_dim % tk == 0:
            return tk
        tk -= 128
    return repr_dim


@functools.partial(jax.jit,
                   static_argnames=("feature_dim", "block_b", "block_k"))
def critic_forward(obs, action, packed, *, feature_dim, block_b=None,
                   block_k=2048):
    wt, tv, w1h, w1a, w2a, w2b, hv = packed
    B, R = obs.shape
    A = action.shape[1]
    FP = wt.shape[1]           # feature_dim padded to a multiple of 128
    HP = w2a.shape[0]          # hidden_dim  padded to a multiple of 128

    # bf16 activations at the call boundary (if the upstream encoder already
    # emits bf16 this cast is a no-op); halves the dominant obs HBM stream.
    obs = obs.astype(jnp.bfloat16)
    action = action.astype(jnp.bfloat16)

    # Batch tile: 128 fits v7x's 64 MiB VMEM; on v6e (128 MiB) block_b=256 is
    # a good choice once weights are single-buffered and obs is bf16.
    TB = block_b if block_b is not None else min(B, 128)
    assert B % TB == 0, "batch must be a multiple of the batch tile"
    TK = _choose_block_k(R, block_k)
    grid = (B // TB, R // TK)

    kernel = functools.partial(_critic_kernel, feature_dim=feature_dim,
                               hidden_pad=HP)

    const = pl.Buffered(1)     # single-buffer the grid-invariant weights

    # Explicit VMEM budget: double-buffered streams + single-buffered weights
    # + output + accumulator scratch, with 2x headroom (clamped to 64 MiB).
    vmem_bytes = (
        2 * (TB * TK * 2 + TB * A * 2 + TK * FP * 2)           # obs, act, wt
        + (tv.size * 4 + w1h.size * 2 + w1a.size * 2
           + w2a.size * 2 + w2b.size * 2 + hv.size * 4)        # resident weights
        + 2 * TB * 128 * 4                                     # output
        + TB * FP * 4)                                         # accumulator
    vmem_limit = int(min(64 * 1024 * 1024,
                         max(16 * 1024 * 1024, 2 * vmem_bytes + (4 << 20))))

    flops = 2 * B * (R * FP + FP * 2 * HP + A * 2 * HP + 2 * HP * HP) \
        + 6 * B * HP
    bytes_accessed = (obs.size * 2 + action.size * 2 + wt.size * 2
                      + tv.size * 4 + w1h.size * 2 + w1a.size * 2
                      + w2a.size * 2 + w2b.size * 2 + hv.size * 4
                      + B * 128 * 4)

    out = pl.pallas_call(
        kernel,
        out_shape=jax.ShapeDtypeStruct((B, 128), jnp.float32),
        grid=grid,
        in_specs=[
            pl.BlockSpec((TB, TK), lambda i, k: (i, k)),          # obs (bf16)
            pl.BlockSpec((TB, A), lambda i, k: (i, 0)),           # action (bf16)
            pl.BlockSpec((TK, FP), lambda i, k: (k, 0)),          # trunk W (bf16)
            pl.BlockSpec((3, FP), lambda i, k: (0, 0),
                         pipeline_mode=const),                    # [bt; gamma; beta]
            pl.BlockSpec((FP, 2 * HP), lambda i, k: (0, 0),
                         pipeline_mode=const),                    # fused W1 (h part)
            pl.BlockSpec((A, 2 * HP), lambda i, k: (0, 0),
                         pipeline_mode=const),                    # fused W1 (action part)
            pl.BlockSpec((HP, HP), lambda i, k: (0, 0),
                         pipeline_mode=const),                    # W2 head 1
            pl.BlockSpec((HP, HP), lambda i, k: (0, 0),
                         pipeline_mode=const),                    # W2 head 2
            pl.BlockSpec((4, 2 * HP), lambda i, k: (0, 0),
                         pipeline_mode=const),                    # [b1; b2; w3; b3]
        ],
        out_specs=pl.BlockSpec((TB, 128), lambda i, k: (i, 0)),
        scratch_shapes=[pltpu.VMEM((TB, FP), jnp.float32)],
        compiler_params=pltpu.CompilerParams(
            dimension_semantics=("parallel", "arbitrary"),
            vmem_limit_bytes=vmem_limit),
        cost_estimate=pl.CostEstimate(flops=flops,
                                      transcendentals=B * FP,
                                      bytes_accessed=bytes_accessed),
    )(obs, action, wt, tv, w1h, w1a, w2a, w2b, hv)

    return out[:, 0:1], out[:, 1:2]


# ----------------------------------------------------------------------------
# Parameter construction (synthetic, PyTorch-shaped) and packing
# ----------------------------------------------------------------------------
def init_raw_params(key, repr_dim, action_dim, feature_dim, hidden_dim):
    """Deterministic synthetic params in the nn.Module layout."""
    f32 = jnp.float32
    ks = jax.random.split(key, 4)

    def lin(k, fi, fo, scale=0.1):
        return scale * jax.random.normal(k, (fi, fo), dtype=f32)

    wt = lin(ks[0], repr_dim, feature_dim)
    bt = 0.01 * jax.random.normal(ks[1], (feature_dim,), dtype=f32)
    ln_g = jnp.ones((feature_dim,), f32)
    ln_b = jnp.zeros((feature_dim,), f32)

    def q_head(kb):
        k = jax.random.split(kb, 6)
        w1 = lin(k[0], feature_dim + action_dim, hidden_dim)
        b1 = 0.01 * jax.random.normal(k[1], (hidden_dim,), dtype=f32)
        w2 = lin(k[2], hidden_dim, hidden_dim)
        b2 = 0.01 * jax.random.normal(k[3], (hidden_dim,), dtype=f32)
        w3 = lin(k[4], hidden_dim, 1)
        b3 = 0.01 * jax.random.normal(k[5], (1,), dtype=f32)
        return (w1, b1, w2, b2, w3, b3)

    return (wt, bt, ln_g, ln_b), q_head(ks[2]), q_head(ks[3])


def pack_params(trunk, q1, q2, *, feature_dim, action_dim, hidden_dim):
    """Fuse / pad / pack the raw params into the kernel's 7 operands."""
    f32, bf16 = jnp.float32, jnp.bfloat16
    wt, bt, ln_g, ln_b = trunk
    F, H, A = feature_dim, hidden_dim, action_dim
    FP = _round_up(F, 128)
    HP = _round_up(H, 128)

    def pad1(v, width):
        return jnp.pad(v, (0, width - v.shape[0]))

    def pad2(w, rows, cols):
        return jnp.pad(w, ((0, rows - w.shape[0]), (0, cols - w.shape[1])))

    wt_p = jnp.pad(wt, ((0, 0), (0, FP - F))).astype(bf16)            # (R, FP)
    tv = jnp.stack([pad1(bt, FP), pad1(ln_g, FP), pad1(ln_b, FP)])    # (3, FP)

    (w1_1, b1_1, w2_1, b2_1, w3_1, b3_1) = q1
    (w1_2, b1_2, w2_2, b2_2, w3_2, b3_2) = q2

    # Layer 1: split rows into h / action parts, concat heads on output axis.
    w1h = jnp.concatenate([pad2(w1_1[:F], FP, HP), pad2(w1_2[:F], FP, HP)],
                          axis=1).astype(bf16)                        # (FP, 2HP)
    w1a = jnp.concatenate([pad2(w1_1[F:], A, HP), pad2(w1_2[F:], A, HP)],
                          axis=1).astype(bf16)                        # (A, 2HP)

    # Layer 2: one (HP, HP) matrix per head (replaces block-diag 2HPx2HP).
    w2a = pad2(w2_1, HP, HP).astype(bf16)
    w2b = pad2(w2_2, HP, HP).astype(bf16)

    b1 = jnp.concatenate([pad1(b1_1, HP), pad1(b1_2, HP)])
    b2 = jnp.concatenate([pad1(b2_1, HP), pad1(b2_2, HP)])
    w3 = jnp.concatenate([pad1(w3_1[:, 0], HP), pad1(w3_2[:, 0], HP)])
    b3 = jnp.zeros((2 * HP,), f32).at[0].set(b3_1[0]).at[1].set(b3_2[0])
    hv = jnp.stack([b1, b2, w3, b3], axis=0)                          # (4, 2HP)

    return (wt_p, tv, w1h, w1a, w2a, w2b, hv)


# ----------------------------------------------------------------------------
# Pure-JAX reference (mirrors the PyTorch forward, f32 throughout)
# ----------------------------------------------------------------------------
def critic_reference(obs, action, trunk, q1, q2):
    wt, bt, ln_g, ln_b = trunk
    h = obs @ wt + bt
    mu = jnp.mean(h, axis=-1, keepdims=True)
    var = jnp.mean((h - mu) ** 2, axis=-1, keepdims=True)
    h = (h - mu) / jnp.sqrt(var + 1e-5) * ln_g + ln_b
    h = jnp.tanh(h)
    ha = jnp.concatenate([h, action], axis=-1)

    def head(p):
        w1, b1, w2, b2, w3, b3 = p
        x = jax.nn.relu(ha @ w1 + b1)
        x = jax.nn.relu(x @ w2 + b2)
        return x @ w3 + b3

    return head(q1), head(q2)


# ----------------------------------------------------------------------------
if __name__ == "__main__":
    B = 8
    repr_dim, action_dim, feature_dim, hidden_dim = 64, 4, 32, 32

    key = jax.random.PRNGKey(0)
    k_obs, k_act, k_par = jax.random.split(key, 3)
    obs = jax.random.normal(k_obs, (B, repr_dim), dtype=jnp.float32)
    action = jax.random.uniform(k_act, (B, action_dim), dtype=jnp.float32,
                                minval=-1.0, maxval=1.0)

    trunk, q1p, q2p = init_raw_params(k_par, repr_dim, action_dim,
                                      feature_dim, hidden_dim)
    packed = pack_params(trunk, q1p, q2p, feature_dim=feature_dim,
                         action_dim=action_dim, hidden_dim=hidden_dim)

    q1, q2 = critic_forward(obs, action, packed, feature_dim=feature_dim)
    jax.block_until_ready((q1, q2))

    r1, r2 = critic_reference(obs, action, trunk, q1p, q2p)
    assert q1.shape == (B, 1) and q2.shape == (B, 1)
    # bf16 matmul operands / activations with f32 accumulation vs. an all-f32
    # reference: compare at bf16-quantization tolerance.
    assert jnp.allclose(q1, r1, atol=5e-2, rtol=5e-2)
    assert jnp.allclose(q2, r2, atol=5e-2, rtol=5e-2)
    print("KERNEL_OK")
</pallas_src>

<mosaic_0001>
module attributes {stable_mosaic.version = 11 : i64} {
  func.func @_critic_kernel(%arg0: i32, %arg1: i32, %arg2: memref<8x64xbf16, #tpu.memory_space<vmem>>, %arg3: memref<8x4xbf16, #tpu.memory_space<vmem>>, %arg4: memref<64x128xbf16, #tpu.memory_space<vmem>>, %arg5: memref<3x128xf32, #tpu.memory_space<vmem>>, %arg6: memref<128x256xbf16, #tpu.memory_space<vmem>>, %arg7: memref<4x256xbf16, #tpu.memory_space<vmem>>, %arg8: memref<128x128xbf16, #tpu.memory_space<vmem>>, %arg9: memref<128x128xbf16, #tpu.memory_space<vmem>>, %arg10: memref<4x256xf32, #tpu.memory_space<vmem>>, %arg11: memref<8x128xf32, #tpu.memory_space<vmem>>, %arg12: memref<8x128xf32, #tpu.memory_space<vmem>>) attributes {dimension_semantics = [#tpu.dimension_semantics<parallel>, #tpu.dimension_semantics<arbitrary>], iteration_bounds = array<i64: 1, 1>, scalar_prefetch = 0 : i64, scratch_operands = 1 : i64, tpu.core_type = #tpu.core_type<tc>, window_params = [{transform_indices = @transform_0, window_bounds = array<i64: 8, 64>}, {transform_indices = @transform_1, window_bounds = array<i64: 8, 4>}, {transform_indices = @transform_2, window_bounds = array<i64: 64, 128>}, {pipeline_mode = #tpu.pipeline_mode<synchronous>, transform_indices = @transform_3, window_bounds = array<i64: 3, 128>}, {pipeline_mode = #tpu.pipeline_mode<synchronous>, transform_indices = @transform_4, window_bounds = array<i64: 128, 256>}, {pipeline_mode = #tpu.pipeline_mode<synchronous>, transform_indices = @transform_5, window_bounds = array<i64: 4, 256>}, {pipeline_mode = #tpu.pipeline_mode<synchronous>, transform_indices = @transform_6, window_bounds = array<i64: 128, 128>}, {pipeline_mode = #tpu.pipeline_mode<synchronous>, transform_indices = @transform_7, window_bounds = array<i64: 128, 128>}, {pipeline_mode = #tpu.pipeline_mode<synchronous>, transform_indices = @transform_8, window_bounds = array<i64: 4, 256>}, {transform_indices = @transform_9, window_bounds = array<i64: 8, 128>}]} {
    %c0_i32 = arith.constant 0 : i32
    %0 = arith.cmpi eq, %arg1, %c0_i32 : i32
    %1 = arith.extui %0 : i1 to i32
    %c0_i32_0 = arith.constant 0 : i32
    %2 = arith.cmpi ne, %1, %c0_i32_0 : i32
    scf.if %2 {
      %cst_10 = arith.constant 0.000000e+00 : f32
      %12 = vector.broadcast %cst_10 : f32 to vector<8x128xf32>
      %c0_11 = arith.constant 0 : index
      %c0_12 = arith.constant 0 : index
      %13 = vector.load %arg12[%c0_11, %c0_12] : memref<8x128xf32, #tpu.memory_space<vmem>>, vector<8x128xf32>
      tpu.vector_store %arg12[%c0_11, %c0_12], %12 {strides = array<i32>} : memref<8x128xf32, #tpu.memory_space<vmem>>, vector<8x128xf32>,
    } else {
    }
    %c0 = arith.constant 0 : index
    %c0_1 = arith.constant 0 : index
    %3 = vector.load %arg12[%c0, %c0_1] : memref<8x128xf32, #tpu.memory_space<vmem>>, vector<8x128xf32>
    %c0_2 = arith.constant 0 : index
    %c0_3 = arith.constant 0 : index
    %4 = vector.load %arg2[%c0_2, %c0_3] : memref<8x64xbf16, #tpu.memory_space<vmem>>, vector<8x64xbf16>
    %c0_4 = arith.constant 0 : index
    %c0_5 = arith.constant 0 : index
    %5 = vector.load %arg4[%c0_4, %c0_5] : memref<64x128xbf16, #tpu.memory_space<vmem>>, vector<64x128xbf16>
    %cst = arith.constant dense<0.000000e+00> : vector<8x128xf32>
    %6 = tpu.matmul %4, %5, %cst {dimension_numbers = #tpu.dot_dimension_numbers<[1], [0], [0], [1], [0, 0, 1, 1], [], []>} : vector<8x64xbf16>, vector<64x128xbf16>, vector<8x128xf32> -> vector<8x128xf32>
    %7 = arith.addf %3, %6 : vector<8x128xf32>
    %c0_6 = arith.constant 0 : index
    %c0_7 = arith.constant 0 : index
    %8 = vector.load %arg12[%c0_6, %c0_7] : memref<8x128xf32, #tpu.memory_space<vmem>>, vector<8x128xf32>
    tpu.vector_store %arg12[%c0_6, %c0_7], %7 {strides = array<i32>} : memref<8x128xf32, #tpu.memory_space<vmem>>, vector<8x128xf32>,
    %c0_i32_8 = arith.constant 0 : i32
    %9 = arith.cmpi eq, %arg1, %c0_i32_8 : i32
    %10 = arith.extui %9 : i1 to i32
    %c0_i32_9 = arith.constant 0 : i32
    %11 = arith.cmpi ne, %10, %c0_i32_9 : i32
    scf.if %11 {
      %c0_10 = arith.constant 0 : index
      %c0_11 = arith.constant 0 : index
      %12 = vector.load %arg12[%c0_10, %c0_11] : memref<8x128xf32, #tpu.memory_space<vmem>>, vector<8x128xf32>
      %c0_12 = arith.constant 0 : index
      %c0_13 = arith.constant 0 : index
      %13 = vector.load %arg5[%c0_12, %c0_13] : memref<3x128xf32, #tpu.memory_space<vmem>>, vector<1x128xf32>
      %14 = vector.broadcast %13 : vector<1x128xf32> to vector<8x128xf32>
      %15 = arith.addf %12, %14 : vector<8x128xf32>
      %cst_14 = arith.constant dense<0.000000e+00> : vector<8xf32>
      %16 = vector.multi_reduction <add>, %15, %cst_14 [1] : vector<8x128xf32> to vector<8xf32>
      %17 = vector.shape_cast %16 : vector<8xf32> to vector<8x1xf32>
      %cst_15 = arith.constant 3.125000e-02 : f32
      %18 = vector.broadcast %cst_15 : f32 to vector<8x1xf32>
      %19 = arith.mulf %17, %18 : vector<8x1xf32>
      %20 = arith.mulf %15, %15 : vector<8x128xf32>
      %cst_16 = arith.constant dense<0.000000e+00> : vector<8xf32>
      %21 = vector.multi_reduction <add>, %20, %cst_16 [1] : vector<8x128xf32> to vector<8xf32>
      %22 = vector.shape_cast %21 : vector<8xf32> to vector<8x1xf32>
      %cst_17 = arith.constant 3.125000e-02 : f32
      %23 = vector.broadcast %cst_17 : f32 to vector<8x1xf32>
      %24 = arith.mulf %22, %23 : vector<8x1xf32>
      %25 = arith.mulf %19, %19 : vector<8x1xf32>
      %26 = arith.subf %24, %25 : vector<8x1xf32>
      %27 = vector.broadcast %19 : vector<8x1xf32> to vector<8x128xf32>
      %28 = arith.subf %15, %27 : vector<8x128xf32>
      %cst_18 = arith.constant 9.99999974E-6 : f32
      %29 = vector.broadcast %cst_18 : f32 to vector<8x1xf32>
      %30 = arith.addf %26, %29 : vector<8x1xf32>
      %31 = math.rsqrt %30 : vector<8x1xf32>
      %32 = vector.broadcast %31 : vector<8x1xf32> to vector<8x128xf32>
      %33 = arith.mulf %28, %32 : vector<8x128xf32>
      %c1 = arith.constant 1 : index
      %c0_19 = arith.constant 0 : index
      %34 = vector.load %arg5[%c1, %c0_19] : memref<3x128xf32, #tpu.memory_space<vmem>>, vector<1x128xf32>
      %35 = vector.broadcast %34 : vector<1x128xf32> to vector<8x128xf32>
      %36 = arith.mulf %33, %35 : vector<8x128xf32>
      %c2 = arith.constant 2 : index
      %c0_20 = arith.constant 0 : index
      %37 = vector.load %arg5[%c2, %c0_20] : memref<3x128xf32, #tpu.memory_space<vmem>>, vector<1x128xf32>
      %38 = vector.broadcast %37 : vector<1x128xf32> to vector<8x128xf32>
      %39 = arith.addf %36, %38 : vector<8x128xf32>
      %40 = math.tanh %39 : vector<8x128xf32>
      %41 = arith.truncf %40 : vector<8x128xf32> to vector<8x128xbf16>
      %c0_21 = arith.constant 0 : index
      %c0_22 = arith.constant 0 : index
      %42 = vector.load %arg6[%c0_21, %c0_22] : memref<128x256xbf16, #tpu.memory_space<vmem>>, vector<128x256xbf16>
      %cst_23 = arith.constant dense<0.000000e+00> : vector<8x256xf32>
      %43 = tpu.matmul %41, %42, %cst_23 {dimension_numbers = #tpu.dot_dimension_numbers<[1], [0], [0], [1], [0, 0, 1, 1], [], []>} : vector<8x128xbf16>, vector<128x256xbf16>, vector<8x256xf32> -> vector<8x256xf32>
      %c0_24 = arith.constant 0 : index
      %c0_25 = arith.constant 0 : index
      %44 = vector.load %arg3[%c0_24, %c0_25] : memref<8x4xbf16, #tpu.memory_space<vmem>>, vector<8x4xbf16>
      %c0_26 = arith.constant 0 : index
      %c0_27 = arith.constant 0 : index
      %45 = vector.load %arg7[%c0_26, %c0_27] : memref<4x256xbf16, #tpu.memory_space<vmem>>, vector<4x256xbf16>
      %cst_28 = arith.constant dense<0.000000e+00> : vector<8x256xf32>
      %46 = tpu.matmul %44, %45, %cst_28 {dimension_numbers = #tpu.dot_dimension_numbers<[1], [0], [0], [1], [0, 0, 1, 1], [], []>} : vector<8x4xbf16>, vector<4x256xbf16>, vector<8x256xf32> -> vector<8x256xf32>
      %47 = arith.addf %43, %46 : vector<8x256xf32>
      %c0_29 = arith.constant 0 : index
      %c0_30 = arith.constant 0 : index
      %48 = vector.load %arg10[%c0_29, %c0_30] : memref<4x256xf32, #tpu.memory_space<vmem>>, vector<1x256xf32>
      %49 = vector.broadcast %48 : vector<1x256xf32> to vector<8x256xf32>
      %50 = arith.addf %47, %49 : vector<8x256xf32>
      %cst_31 = arith.constant 0.000000e+00 : f32
      %51 = vector.broadcast %cst_31 : f32 to vector<8x256xf32>
      %52 = arith.maximumf %50, %51 : vector<8x256xf32>
      %53 = vector.extract_strided_slice %52 {offsets = [0, 0], sizes = [8, 128], strides = [1, 1]} : vector<8x256xf32> to vector<8x128xf32>
      %54 = arith.truncf %53 : vector<8x128xf32> to vector<8x128xbf16>
      %c0_32 = arith.constant 0 : index
      %c0_33 = arith.constant 0 : index
      %55 = vector.load %arg8[%c0_32, %c0_33] : memref<128x128xbf16, #tpu.memory_space<vmem>>, vector<128x128xbf16>
      %cst_34 = arith.constant dense<0.000000e+00> : vector<8x128xf32>
      %56 = tpu.matmul %54, %55, %cst_34 {dimension_numbers = #tpu.dot_dimension_numbers<[1], [0], [0], [1], [0, 0, 1, 1], [], []>} : vector<8x128xbf16>, vector<128x128xbf16>, vector<8x128xf32> -> vector<8x128xf32>
      %c1_35 = arith.constant 1 : index
      %c0_36 = arith.constant 0 : index
      %57 = vector.load %arg10[%c1_35, %c0_36] : memref<4x256xf32, #tpu.memory_space<vmem>>, vector<1x128xf32>
      %58 = vector.broadcast %57 : vector<1x128xf32> to vector<8x128xf32>
      %59 = arith.addf %56, %58 : vector<8x128xf32>
      %60 = vector.extract_strided_slice %52 {offsets = [0, 128], sizes = [8, 128], strides = [1, 1]} : vector<8x256xf32> to vector<8x128xf32>
      %61 = arith.truncf %60 : vector<8x128xf32> to vector<8x128xbf16>
      %c0_37 = arith.constant 0 : index
      %c0_38 = arith.constant 0 : index
      %62 = vector.load %arg9[%c0_37, %c0_38] : memref<128x128xbf16, #tpu.memory_space<vmem>>, vector<128x128xbf16>
      %cst_39 = arith.constant dense<0.000000e+00> : vector<8x128xf32>
      %63 = tpu.matmul %61, %62, %cst_39 {dimension_numbers = #tpu.dot_dimension_numbers<[1], [0], [0], [1], [0, 0, 1, 1], [], []>} : vector<8x128xbf16>, vector<128x128xbf16>, vector<8x128xf32> -> vector<8x128xf32>
      %c1_40 = arith.constant 1 : index
      %c128 = arith.constant 128 : index
      %64 = vector.load %arg10[%c1_40, %c128] : memref<4x256xf32, #tpu.memory_space<vmem>>, vector<1x128xf32>
      %65 = vector.broadcast %64 : vector<1x128xf32> to vector<8x128xf32>
      %66 = arith.addf %63, %65 : vector<8x128xf32>
      %cst_41 = arith.constant 0.000000e+00 : f32
      %67 = vector.broadcast %cst_41 : f32 to vector<8x128xf32>
      %68 = arith.maximumf %59, %67 : vector<8x128xf32>
      %cst_42 = arith.constant 0.000000e+00 : f32
      %69 = vector.broadcast %cst_42 : f32 to vector<8x128xf32>
      %70 = arith.maximumf %66, %69 : vector<8x128xf32>
      %c2_43 = arith.constant 2 : index
      %c0_44 = arith.constant 0 : index
      %71 = vector.load %arg10[%c2_43, %c0_44] : memref<4x256xf32, #tpu.memory_space<vmem>>, vector<1x128xf32>
      %72 = vector.broadcast %71 : vector<1x128xf32> to vector<8x128xf32>
      %73 = arith.mulf %68, %72 : vector<8x128xf32>
      %cst_45 = arith.constant dense<0.000000e+00> : vector<8xf32>
      %74 = vector.multi_reduction <add>, %73, %cst_45 [1] : vector<8x128xf32> to vector<8xf32>
      %75 = vector.shape_cast %74 : vector<8xf32> to vector<8x1xf32>
      %c3 = arith.constant 3 : index
      %c0_46 = arith.constant 0 : index
      %76 = vector.load %arg10[%c3, %c0_46] : memref<4x256xf32, #tpu.memory_space<vmem>>, vector<1x1xf32>
      %77 = vector.broadcast %76 : vector<1x1xf32> to vector<8x1xf32>
      %78 = arith.addf %75, %77 : vector<8x1xf32>
      %c2_47 = arith.constant 2 : index
      %c128_48 = arith.constant 128 : index
      %79 = vector.load %arg10[%c2_47, %c128_48] : memref<4x256xf32, #tpu.memory_space<vmem>>, vector<1x128xf32>
      %80 = vector.broadcast %79 : vector<1x128xf32> to vector<8x128xf32>
      %81 = arith.mulf %70, %80 : vector<8x128xf32>
      %cst_49 = arith.constant dense<0.000000e+00> : vector<8xf32>
      %82 = vector.multi_reduction <add>, %81, %cst_49 [1] : vector<8x128xf32> to vector<8xf32>
      %83 = vector.shape_cast %82 : vector<8xf32> to vector<8x1xf32>
      %c3_50 = arith.constant 3 : index
      %c1_51 = arith.constant 1 : index
      %84 = vector.load %arg10[%c3_50, %c1_51] : memref<4x256xf32, #tpu.memory_space<vmem>>, vector<1x1xf32>
      %85 = vector.broadcast %84 : vector<1x1xf32> to vector<8x1xf32>
      %86 = arith.addf %83, %85 : vector<8x1xf32>
      %87 = tpu.iota {dimensions = array<i32: 1>} : vector<8x128xi32>
      %c0_i32_52 = arith.constant 0 : i32
      %88 = vector.broadcast %c0_i32_52 : i32 to vector<8x128xi32>
      %89 = arith.cmpi eq, %87, %88 : vector<8x128xi32>
      %c1_i32 = arith.constant 1 : i32
      %90 = vector.broadcast %c1_i32 : i32 to vector<8x128xi32>
      %91 = arith.cmpi eq, %87, %90 : vector<8x128xi32>
      %cst_53 = arith.constant 0.000000e+00 : f32
      %92 = vector.shape_cast %86 : vector<8x1xf32> to vector<8x1xf32>
      %93 = vector.broadcast %92 : vector<8x1xf32> to vector<8x128xf32>
      %94 = vector.broadcast %cst_53 : f32 to vector<8x128xf32>
      %95 = arith.select %91, %93, %94 : vector<8x128xi1>, vector<8x128xf32>
      %96 = vector.shape_cast %78 : vector<8x1xf32> to vector<8x1xf32>
      %97 = vector.broadcast %96 : vector<8x1xf32> to vector<8x128xf32>
      %98 = arith.select %89, %97, %95 : vector<8x128xi1>, vector<8x128xf32>
      %c0_54 = arith.constant 0 : index
      %c0_55 = arith.constant 0 : index
      %99 = vector.load %arg11[%c0_54, %c0_55] : memref<8x128xf32, #tpu.memory_space<vmem>>, vector<8x128xf32>
      tpu.vector_store %arg11[%c0_54, %c0_55], %98 {strides = array<i32>} : memref<8x128xf32, #tpu.memory_space<vmem>>, vector<8x128xf32>,
    } else {
    }
    return
  }
  func.func @transform_0(%arg0: i32, %arg1: i32) -> (i32, i32) {
    %c0_i32 = arith.constant 0 : i32
    return %arg0, %arg1 : i32, i32
  }
  func.func @transform_1(%arg0: i32, %arg1: i32) -> (i32, i32) {
    %c0_i32 = arith.constant 0 : i32
    %c0_i32_0 = arith.constant 0 : i32
    return %arg0, %c0_i32 : i32, i32
  }
  func.func @transform_2(%arg0: i32, %arg1: i32) -> (i32, i32) {
    %c0_i32 = arith.constant 0 : i32
    %c0_i32_0 = arith.constant 0 : i32
    return %arg1, %c0_i32 : i32, i32
  }
  func.func @transform_3(%arg0: i32, %arg1: i32) -> (i32, i32) {
    %c0_i32 = arith.constant 0 : i32
    %c0_i32_0 = arith.constant 0 : i32
    %c0_i32_1 = arith.constant 0 : i32
    return %c0_i32, %c0_i32_0 : i32, i32
  }
  func.func @transform_4(%arg0: i32, %arg1: i32) -> (i32, i32) {
    %c0_i32 = arith.constant 0 : i32
    %c0_i32_0 = arith.constant 0 : i32
    %c0_i32_1 = arith.constant 0 : i32
    return %c0_i32, %c0_i32_0 : i32, i32
  }
  func.func @transform_5(%arg0: i32, %arg1: i32) -> (i32, i32) {
    %c0_i32 = arith.constant 0 : i32
    %c0_i32_0 = arith.constant 0 : i32
    %c0_i32_1 = arith.constant 0 : i32
    return %c0_i32, %c0_i32_0 : i32, i32
  }
  func.func @transform_6(%arg0: i32, %arg1: i32) -> (i32, i32) {
    %c0_i32 = arith.constant 0 : i32
    %c0_i32_0 = arith.constant 0 : i32
    %c0_i32_1 = arith.constant 0 : i32
    return %c0_i32, %c0_i32_0 : i32, i32
  }
  func.func @transform_7(%arg0: i32, %arg1: i32) -> (i32, i32) {
    %c0_i32 = arith.constant 0 : i32
    %c0_i32_0 = arith.constant 0 : i32
    %c0_i32_1 = arith.constant 0 : i32
    return %c0_i32, %c0_i32_0 : i32, i32
  }
  func.func @transform_8(%arg0: i32, %arg1: i32) -> (i32, i32) {
    %c0_i32 = arith.constant 0 : i32
    %c0_i32_0 = arith.constant 0 : i32
    %c0_i32_1 = arith.constant 0 : i32
    return %c0_i32, %c0_i32_0 : i32, i32
  }
  func.func @transform_9(%arg0: i32, %arg1: i32) -> (i32, i32) {
    %c0_i32 = arith.constant 0 : i32
    %c0_i32_0 = arith.constant 0 : i32
    return %arg0, %c0_i32 : i32, i32
  }
}

</mosaic_0001>

<bundles_post_ra>
// kernel: critic_forward.1
= control target key start
LH: loop header
LB: loop body
LE: loop exit
PB: predicated region body
PF: predicated region fallthrough
CT: control target
= control target key end

     0   :  { %14 = vsyncpa [#allocation4], 0  ;;  %s1176_s0 = inlined_call_operand.vmem [shape: bf16[8,64], index: 0, kind: input, shape index: {}]   ;;  %s1177_s1 = inlined_call_operand.vmem [shape: bf16[8,4], index: 1, kind: input, shape index: {}]   ;;  %s1178_s2 = inlined_call_operand.hbm [shape: bf16[64,128], index: 2, kind: input, shape index: {}]   ;;  %s1179_s3 = inlined_call_operand.vmem [shape: f32[3,128], index: 3, kind: input, shape index: {}]   ;;  %s1180_s4 = inlined_call_operand.hbm [shape: bf16[128,256], index: 4, kind: input, shape index: {}]   ;;  %s1181_s5 = inlined_call_operand.vmem [shape: bf16[4,256], index: 5, kind: input, shape index: {}]   ;;  %s1182_s6 = inlined_call_operand.hbm [shape: bf16[128,128], index: 6, kind: input, shape index: {}]   ;;  %s1183_s7 = inlined_call_operand.hbm [shape: bf16[128,128], index: 7, kind: input, shape index: {}]   ;;  %s1184_s8 = inlined_call_operand.vmem [shape: f32[4,256], index: 8, kind: input, shape index: {}]   ;;  %s1185_s9 = inlined_call_operand.vmem [shape: f32[8,128], index: 9, kind: output, shape index: {}]  }
   0x1   :  { %15 = vsyncpa [#allocation6], 0 }
   0x2   :  { %16 = vsyncpa [#allocation9], 0  ;;  %s975_s30 = smov [#allocation5]   ;;  %s881_s13 = scalar_lea.hbm %s1180_s4, 2048 }
   0x3   :  { %s40_s10 = sshll.u32 %s975_s30, 4  ;;  %p882_p0 = scmp.ne.s32.totalorder %s1180_s4, %s881_s13  ;;  %s41_s10 = int_to_ptr.vmem [resolvable:$true] %s40_s10 }
   0x4   :  { %p885_p1 = scmp.lt.u32.totalorder %s881_s13, %s1180_s4 }
   0x6   :  { %p887_p2 = pnand %p885_p1, %p882_p0 }
   0x8   :  { %890 = shalt.err (!%p887_p2)
}
   0x9   :  { %s891_s18 = scalar_lea.vmem %s41_s10, 2048  ;;  %p896_p4 = scmp.lt.s32.totalorder %s41_s10, %s41_s10 }
   0xa   :  { %p892_p3 = scmp.ne.s32.totalorder %s41_s10, %s891_s18  ;;  %p897_p5 = scmp.lt.s32.totalorder %s891_s18, %s891_s18 }
   0xc   :  { %p898_p6 = por %p897_p5, %p896_p4 }
   0xe   :  { %p899_p7 = pnand %p898_p6, %p892_p3 }
  0x10   :  { %902 = shalt.err (!%p899_p7)
}
  0x11   :  { %s976_s19 = smov 128   ;;  %s977_s20 = smov 8  }
  0x12   :  { %46 = dma.hbm_to_vmem [thread:$0]  %s1180_s4, 2048, %s41_s10, [#allocation6], %s976_s19, %s976_s19, %s977_s20  }
  0x13   :  { %s978_s23 = smov [#allocation3]   ;;  %s903_s27 = scalar_lea.hbm %s1178_s2, 512 }
  0x14   :  { %s26_s24 = sshll.u32 %s978_s23, 4  ;;  %p904_p8 = scmp.ne.s32.totalorder %s1178_s2, %s903_s27  ;;  %s27_s24 = int_to_ptr.vmem [resolvable:$true] %s26_s24 }
  0x15   :  { %p907_p9 = scmp.lt.u32.totalorder %s903_s27, %s1178_s2 }
  0x17   :  { %p909_p10 = pnand %p907_p9, %p904_p8 }
  0x19   :  { %912 = shalt.err (!%p909_p10)
}
  0x1a   :  { %s913_s12 = scalar_lea.vmem %s27_s24, 512  ;;  %p918_p12 = scmp.lt.s32.totalorder %s27_s24, %s27_s24 }
  0x1b   :  { %p914_p11 = scmp.ne.s32.totalorder %s27_s24, %s913_s12  ;;  %p919_p13 = scmp.lt.s32.totalorder %s913_s12, %s913_s12 }
  0x1d   :  { %p920_p0 = por %p919_p13, %p918_p12 }
  0x1f   :  { %p921_p1 = pnand %p920_p0, %p914_p11 }
  0x21   :  { %924 = shalt.err (!%p921_p1)
}
  0x22   :  { %s979_s4 = smov 64   ;;  %s980_s10 = smov 4  }
  0x23   :  { %32 = dma.hbm_to_vmem [thread:$0]  %s1178_s2, 512, %s27_s24, [#allocation4], %s979_s4, %s979_s4, %s980_s10  }
  0x24   :  { %s981_s15 = smov [#allocation7]   ;;  %s982_s17 = smov [#allocation8]  }
  0x25   :  { %s54_s16 = sshll.u32 %s981_s15, 4  ;;  %s66_s18 = sshll.u32 %s982_s17, 4  ;;  %s55_s16 = int_to_ptr.vmem [resolvable:$true] %s54_s16  ;;  %s1064_s18 = int_to_ptr.vmem [resolvable:$true] %s66_s18 }
  0x26   :  { %s925_s21 = scalar_lea.hbm %s1182_s6, 1024 }
  0x27   :  { %p926_p2 = scmp.ne.s32.totalorder %s1182_s6, %s925_s21  ;;  %p929_p3 = scmp.lt.u32.totalorder %s925_s21, %s1182_s6 }
  0x29   :  { %p931_p4 = pnand %p929_p3, %p926_p2 }
  0x2b   :  { %934 = shalt.err (!%p931_p4)
}
  0x2c   :  { %s935_s2 = scalar_lea.vmem %s55_s16, 1024  ;;  %p940_p6 = scmp.lt.s32.totalorder %s55_s16, %s55_s16 }
  0x2d   :  { %p936_p5 = scmp.ne.s32.totalorder %s55_s16, %s935_s2  ;;  %p941_p7 = scmp.lt.s32.totalorder %s935_s2, %s935_s2 }
  0x2f   :  { %p942_p8 = por %p941_p7, %p940_p6 }
  0x31   :  { %p943_p9 = pnand %p942_p8, %p936_p5 }
  0x33   :  { %946 = shalt.err (!%p943_p9)
}
  0x34   :  { %60 = dma.hbm_to_vmem [thread:$0]  %s1182_s6, 1024, %s55_s16, [#allocation6], %s979_s4, %s979_s4, %s980_s10  }
  0x35   :  { %s947_s30 = scalar_lea.hbm %s1183_s7, 1024 }
  0x36   :  { %p948_p10 = scmp.ne.s32.totalorder %s1183_s7, %s947_s30  ;;  %p951_p11 = scmp.lt.u32.totalorder %s947_s30, %s1183_s7 }
  0x38   :  { %p953_p12 = pnand %p951_p11, %p948_p10 }
  0x3a   :  { %956 = shalt.err (!%p953_p12)
}
  0x3b   :  { %s957_s15 = scalar_lea.vmem %s1064_s18, 1024  ;;  %p962_p0 = scmp.lt.s32.totalorder %s1064_s18, %s1064_s18 }
  0x3c   :  { %p958_p13 = scmp.ne.s32.totalorder %s1064_s18, %s957_s15  ;;  %p963_p1 = scmp.lt.s32.totalorder %s957_s15, %s957_s15 }
  0x3e   :  { %p964_p2 = por %p963_p1, %p962_p0 }
  0x40   :  { %p965_p3 = pnand %p964_p2, %p958_p13 }
  0x42   :  { %968 = shalt.err (!%p965_p3)
}
  0x43   :  { %72 = dma.hbm_to_vmem [thread:$0]  %s1183_s7, 1024, %s1064_s18, [#allocation9], %s979_s4, %s979_s4, %s980_s10  }
  0x44   :  { %969 = dma.done.wait [#allocation4], 512  }
  0x45   :  { %970 = vsyncadd [#allocation4], 4294966784 }
  0x46   :  { %971 = dma.done.wait [#allocation6], 3072  }
  0x47   :  { %972 = vsyncadd [#allocation6], 4294964224 }
  0x48   :  { %973 = dma.done.wait [#allocation9], 1024  }
  0x49   :  { %974 = vsyncadd [#allocation9], 4294966272  ;;  %v983_v0 = vmov 0.0   ;;  %vm984_vm0 = vmmov 0   ;;  %v833_v1 = vld [vmem:[#allocation3] sm:$0xff]   ;;  %v834_v2 = vld [vmem:[#allocation3 + $0x8] sm:$0xff]  }
  0x4a   :  { %766 = vmatprep.subr.bf16.mxu0 %v983_v0  ;;  %774 = vmatprep.mubr.msk.bf16.mxu0 %vm984_vm0, %v983_v0  ;;  %v835_v3 = vld [vmem:[#allocation3 + $0x10] sm:$0xff]   ;;  %v836_v4 = vld [vmem:[#allocation3 + $0x18] sm:$0xff]   ;;  %vm127_vm1 = vcmask 523264   ;;  %v94_v5 = vld [vmem:[%s1176_s0] sm:$0xf]  ;;  %vm241_vm2 = vcmask 1041408  }
  0x4b   :  { %767 = vmatpush3.bf16.msra.mxu0 %v833_v1  ;;  %v700_v6 = vld [vmem:[%s1179_s3] ss:$0 sm:$0xff]  ;;  %v837_v13 = vld [vmem:[#allocation5 + $0x4] ss:$8 sps:$4 sm:$0xff]   ;;  %v840_v15 = vld [vmem:[#allocation5 + $0x14] ss:$8 sps:$4 sm:$0xff]  }
  0x4c   :  { %768 = vmatprep.subr.bf16.mxu0 %v983_v0  ;;  %v839_v14 = vld [vmem:[#allocation5] ss:$8 sps:$4 sm:$0xff]   ;;  %369 = vmatprep.subr.bf16.mxu1 %v837_v13  ;;  %v842_v16 = vld [vmem:[#allocation5 + $0x10] ss:$8 sps:$4 sm:$0xff]   ;;  %v843_v17 = vld [vmem:[#allocation5 + $0x24] ss:$8 sps:$4 sm:$0xff]  }
  0x4d   :  { %370 = vmatpush1.bf16.msra.mxu1 %v839_v14  ;;  %v845_v18 = vld [vmem:[#allocation5 + $0x20] ss:$8 sps:$4 sm:$0xff]   ;;  %v846_v20 = vld [vmem:[#allocation5 + $0x34] ss:$8 sps:$4 sm:$0xff]   ;;  %v985_v23 = vmov 0   ;;  %vm237_vm3 = vcmask 31744  }
  0x4e   :  { %371 = vmatprep.subr.bf16.mxu1 %v840_v15  ;;  %v703_v19 = vld.sshfl [vmem:[%s1181_s5] sm:$0x33 pattern:$0x76325410]  ;;  %401 = vmatprep.mubr.bf16.mxu1 %v985_v23  ;;  %v848_v24 = vld [vmem:[#allocation5 + $0x30] ss:$8 sps:$4 sm:$0xff]  }
  0x4f   :  { %769 = vmatpush3.bf16.msra.mxu0 %v834_v2  ;;  %v236_v21 = vcombine.high %v703_v19, %v703_v19  ;;  %v243_v22 = vsel %vm241_vm2, %v703_v19, 0  ;;  %831 = vset.pattern.permute.xlu1 %v985_v23  ;;  %v226_v25 = vld [vmem:[%s1177_s1] sm:$0xf]  ;;  %v849_v26 = vld [vmem:[#allocation5 + $0x44] ss:$8 sps:$4 sm:$0xff]   ;;  %v865_v36 = vld [vmem:[#allocation7 + $0x10] sm:$0xff]  }
  0x50   :  { %770 = vmatprep.subr.bf16.mxu0 %v983_v0  ;;  %v851_v27 = vld [vmem:[#allocation5 + $0x40] ss:$8 sps:$4 sm:$0xff]   ;;  %v852_v28 = vld [vmem:[#allocation5 + $0x54] ss:$8 sps:$4 sm:$0xff]   ;;  %v854_v29 = vld [vmem:[#allocation5 + $0x50] ss:$8 sps:$4 sm:$0xff]  }
  0x51   :  { %372 = vmatpush1.bf16.msra.mxu1 %v842_v16  ;;  %v855_v30 = vld [vmem:[#allocation5 + $0x64] ss:$8 sps:$4 sm:$0xff]   ;;  %v857_v31 = vld [vmem:[#allocation5 + $0x60] ss:$8 sps:$4 sm:$0xff]   ;;  %v858_v32 = vld [vmem:[#allocation5 + $0x74] ss:$8 sps:$4 sm:$0xff]  }
  0x52   :  { %373 = vmatprep.subr.bf16.mxu1 %v843_v17  ;;  %v860_v33 = vld [vmem:[#allocation5 + $0x70] ss:$8 sps:$4 sm:$0xff]   ;;  %v861_v34 = vld [vmem:[#allocation7] sm:$0xff]   ;;  %v863_v35 = vld [vmem:[#allocation7 + $0x8] sm:$0xff]  }
  0x53   :  { %771 = vmatpush3.bf16.msra.mxu0 %v835_v3  ;;  %v867_v37 = vld [vmem:[#allocation7 + $0x18] sm:$0xff]   ;;  %v869_v38 = vld [vmem:[#allocation7 + $0x20] sm:$0xff]   ;;  %v871_v39 = vld [vmem:[#allocation7 + $0x28] sm:$0xff]  }
  0x54   :  { %772 = vmatprep.subr.bf16.mxu0 %v983_v0  ;;  %v701_v49 = vld [vmem:[%s1179_s3 + $0x1] ss:$0 sm:$0xff]  ;;  %v702_v51 = vld [vmem:[%s1179_s3 + $0x2] ss:$0 sm:$0xff]  ;;  %v864_v57 = vld [vmem:[#allocation8 + $0x8] sm:$0xff]  }
  0x55   :  { %374 = vmatpush1.bf16.msra.mxu1 %v845_v18  ;;  %v862_v55 = vld [vmem:[#allocation8] sm:$0xff]   ;;  %v866_v58 = vld [vmem:[#allocation8 + $0x10] sm:$0xff]   ;;  %v868_v59 = vld [vmem:[#allocation8 + $0x18] sm:$0xff]  }
  0x56   :  { %375 = vmatprep.subr.bf16.mxu1 %v846_v20  ;;  %v870_v60 = vld [vmem:[#allocation8 + $0x20] sm:$0xff]   ;;  %v872_v61 = vld [vmem:[#allocation8 + $0x28] sm:$0xff]   ;;  %v873_v3 = vld [vmem:[#allocation7 + $0x30] sm:$0xff]  }
  0x57   :  { %773 = vmatpush3.bf16.msra.mxu0 %v836_v4  ;;  %v874_v4 = vld [vmem:[#allocation8 + $0x30] sm:$0xff]  }
  0x58   :  { %704 = vmatprep.subr.msk.bf16.mxu0 %vm241_vm2, %v236_v21 }
  0x59   :  { %376 = vmatpush1.bf16.msra.mxu1 %v848_v24 }
  0x5a   :  { %775 = vmatmul.mubr.msk.bf16.vlgmr.msra.gmra.mrb[0].mxu0 %vm127_vm1, %v94_v5  ;;  %377 = vmatprep.subr.bf16.mxu1 %v849_v26  ;;  %v875_v5 = vld [vmem:[#allocation7 + $0x38] sm:$0xff]   ;;  %v722_v26 = vld [vmem:[%s1184_s8 + $0x1] ss:$0 sm:$0xff] }
  0x5b   :  { %280 = vmatprep.mubr.bf16.mxu0 %v985_v23  ;;  %249 = vmatpush1.bf16.msra.mxu0 %v243_v22 }
  0x5c   :  { %778 = vmatprep.subr.bf16.mxu0 %v983_v0 }
  0x5d   :  { %378 = vmatpush1.bf16.msra.mxu1 %v851_v27  ;;  %v731_v27 = vld [vmem:[%s1184_s8 + $0x5] ss:$0 sm:$0xff] }
  0x5e   :  { %379 = vmatprep.subr.bf16.mxu1 %v852_v28 }
  0x61   :  { %380 = vmatpush1.bf16.msra.mxu1 %v854_v29 }
  0x62   :  { %705 = vmatmul.mubr.msk.bf16.vlgmr.msra.gmra.mrb[4].mxu0 %vm237_vm3, %v226_v25  ;;  %381 = vmatprep.subr.bf16.mxu1 %v855_v30 }
  0x63   :  { %794 = vmatprep.mubr.msk.bf16.mxu0 %vm984_vm0, %v983_v0  ;;  %779 = vmatpush3.bf16.msra.mxu0 %v861_v34 }
  0x64   :  { %780 = vmatprep.subr.bf16.mxu0 %v983_v0 }
  0x65   :  { %382 = vmatpush1.bf16.msra.mxu1 %v857_v31 }
  0x66   :  { %383 = vmatprep.subr.bf16.mxu1 %v858_v32 }
  0x67   :  { %781 = vmatpush3.bf16.msra.mxu0 %v863_v35 }
  0x68   :  { %782 = vmatprep.subr.bf16.mxu0 %v983_v0 }
  0x69   :  { %384 = vmatpush1.bf16.msra.mxu1 %v860_v33 }
  0x6a   :  { %798 = vmatprep.subr.bf16.mxu1 %v983_v0 }
  0x6b   :  { %783 = vmatpush3.bf16.msra.mxu0 %v865_v36 }
  0x6c   :  { %784 = vmatprep.subr.bf16.mxu0 %v983_v0 }
  0x6f   :  { %785 = vmatpush3.bf16.msra.mxu0 %v867_v37  ;;  %v742_v37 = vld [vmem:[%s1184_s8 + $0x6] ss:$0 sm:$0xff] }
  0x70   :  { %786 = vmatprep.subr.bf16.mxu0 %v983_v0 }
  0x73   :  { %787 = vmatpush3.bf16.msra.mxu0 %v869_v38 }
  0x74   :  { %788 = vmatprep.subr.bf16.mxu0 %v983_v0 }
  0x77   :  { %789 = vmatpush3.bf16.msra.mxu0 %v871_v39 }
  0x78   :  { %790 = vmatprep.subr.bf16.mxu0 %v983_v0 }
  0x7b   :  { %791 = vmatpush3.bf16.msra.mxu0 %v873_v3 }
  0x7c   :  { %792 = vmatprep.subr.bf16.mxu0 %v983_v0 }
  0x7f   :  { %793 = vmatpush3.bf16.msra.mxu0 %v875_v5 }
 0x12d   :  { %v165_v7 = vpop.f32.mrb[0].mxu0 }
 0x12e   :  { %v1113_v8 = vadd.f32 %v700_v6, %v165_v7  ;;  %v776_v9 = vpop.f32.mrb[1].mxu0  ;;  %v876_v6 = vld [vmem:[#allocation8 + $0x38] sm:$0xff]   ;;  %v412_v7 = vlaneseq }
 0x12f   :  { %v168_v10 = vpop.f32.mrb[2].mxu0 }
 0x130   :  { %183 = vadd.xlane.f32.xlu0 %v1113_v8  ;;  %v777_v11 = vpop.f32.mrb[3].mxu0  ;;  %v186_v12 = vmul.f32 %v1113_v8, %v1113_v8  ;;  %v410_v10 = vld [vmem:[%s1184_s8] ss:$4 sm:$0x3] }
 0x134   :  { %187 = vadd.xlane.f32.xlu0 %v186_v12 }
 0x135   :  { %v282_v62 = vpop.f32.mrb[4].mxu0 }
 0x136   :  { %v284_v63 = vpop.f32.mrb[5].mxu0 }
 0x137   :  { %v286_v1 = vpop.f32.mrb[6].mxu0 }
 0x138   :  { %v287_v2 = vpop.f32.mrb[7].mxu0 }
 0x1bd   :  { %v184_v40 = vpop.xlane.xlu0 %183 }
 0x1be   :  { %v185_v41 = vmul.f32 0.03125, %v184_v40 }
 0x1c0   :  { %v190_v43 = vmul.f32 %v185_v41, %v185_v41  ;;  %v192_v47 = vsub.f32 %v1113_v8, %v185_v41  ;;  %v413_v8 = vshrl.u32 %v412_v7, 7 }
 0x1c1   :  { %v188_v42 = vpop.xlane.xlu0 %187 }
 0x1c2   :  { %v189_v44 = vmul.f32 0.03125, %v188_v42  ;;  %v414_v9 = vsub.s32 0, %v413_v8  ;;  %v418_v11 = vsub.s32 1, %v413_v8  ;;  %v740_v42 = vld [vmem:[%s1184_s8 + $0x2] ss:$0 sm:$0xff] }
 0x1c4   :  { %v191_v45 = vsub.f32 %v189_v44, %v190_v43  ;;  %v415_v12 = vrot.slane %v410_v10, %v414_v9  ;;  %v419_v14 = vrot.slane %v410_v10, %v418_v11  ;;  %v986_v44 = vmov 1  }
 0x1c5   :  { %830 = vset.pattern.permute.xlu0 %v986_v44 }
 0x1c6   :  { %v193_v46 = vadd.f32 1e-05, %v191_v45  ;;  %v741_v45 = vld [vmem:[%s1184_s8 + $0x3] ss:$0 sm:$0xff] }
 0x1c8   :  { %877 = vrsqrt.f32 %v193_v46 }
 0x1d2   :  { %v878_v48 = vpop.eup %877 }
 0x1d3   :  { %v195_v50 = vmul.f32 %v878_v48, %v192_v47 }
 0x1d5   :  { %v201_v52 = vmul.f32 %v701_v49, %v195_v50  ;;  %v672_v50 = vand.u32 127, %v412_v7 }
 0x1d7   :  { %v207_v53 = vadd.f32 %v702_v51, %v201_v52  ;;  %vm674_vm4 = vcmp.eq.s32.totalorder %v672_v50, 1  ;;  %vm673_vm5 = vcmp.eq.s32.totalorder %v672_v50, 0 }
 0x1d9   :  { %879 = vtanh.f32 %v207_v53 }
 0x1e3   :  { %v880_v54 = vpop.eup %879 }
 0x1e4   :  { %v209_v56 = vpack.c.bf16 %v880_v54, %v880_v54 }
 0x1e6   :  { %402 = vmatmul.mubr.bf16.vlgmr.msra.gmra.mrb[0].mxu1 %v209_v56 }
 0x1e7   :  { %799 = vmatpush3.bf16.msra.mxu1 %v862_v55  ;;  %814 = vmatprep.mubr.msk.bf16.mxu1 %vm984_vm0, %v983_v0 }
 0x1e8   :  { %800 = vmatprep.subr.bf16.mxu1 %v983_v0 }
 0x1eb   :  { %801 = vmatpush3.bf16.msra.mxu1 %v864_v57 }
 0x1ec   :  { %802 = vmatprep.subr.bf16.mxu1 %v983_v0 }
 0x1ef   :  { %803 = vmatpush3.bf16.msra.mxu1 %v866_v58 }
 0x1f0   :  { %804 = vmatprep.subr.bf16.mxu1 %v983_v0 }
 0x1f3   :  { %805 = vmatpush3.bf16.msra.mxu1 %v868_v59 }
 0x1f4   :  { %806 = vmatprep.subr.bf16.mxu1 %v983_v0 }
 0x1f7   :  { %807 = vmatpush3.bf16.msra.mxu1 %v870_v60 }
 0x1f8   :  { %808 = vmatprep.subr.bf16.mxu1 %v983_v0 }
 0x1fb   :  { %809 = vmatpush3.bf16.msra.mxu1 %v872_v61 }
 0x1fc   :  { %810 = vmatprep.subr.bf16.mxu1 %v983_v0 }
 0x1ff   :  { %811 = vmatpush3.bf16.msra.mxu1 %v874_v4 }
 0x200   :  { %812 = vmatprep.subr.bf16.mxu1 %v983_v0 }
 0x203   :  { %813 = vmatpush3.bf16.msra.mxu1 %v876_v6 }
 0x2b9   :  { %v403_v13 = vpop.f32.mrb[0].mxu1 }
 0x2ba   :  { %v404_v15 = vadd.f32 %v403_v13, %v282_v62  ;;  %v405_v16 = vpop.f32.mrb[1].mxu1 }
 0x2bb   :  { %v406_v17 = vadd.f32 %v405_v16, %v284_v63  ;;  %v407_v18 = vpop.f32.mrb[2].mxu1 }
 0x2bc   :  { %v422_v19 = vadd.f32 %v415_v12, %v404_v15  ;;  %v408_v0 = vpop.f32.mrb[3].mxu1 }
 0x2bd   :  { %v423_v20 = vadd.f32 %v419_v14, %v406_v17 }
 0x2be   :  { %v424_v21 = vmax.f32 %v422_v19, 0.0 }
 0x2bf   :  { %v425_v22 = vmax.f32 %v423_v20, 0.0 }
 0x2c0   :  { %v426_v24 = vpack.c.bf16 %v424_v21, %v424_v21 }
 0x2c1   :  { %v536_v25 = vpack.c.bf16 %v425_v22, %v425_v22 }
 0x2c2   :  { %795 = vmatmul.mubr.bf16.vlgmr.msra.gmra.mrb[8].mxu0 %v426_v24 }
 0x2c3   :  { %815 = vmatmul.mubr.bf16.vlgmr.msra.gmra.mrb[4].mxu1 %v536_v25 }
 0x395   :  { %v530_v28 = vpop.f32.mrb[8].mxu0 }
 0x396   :  { %v796_v29 = vpop.f32.mrb[9].mxu0  ;;  %v640_v30 = vpop.f32.mrb[4].mxu1  ;;  %v531_v31 = vadd.f32 %v722_v26, %v530_v28 }
 0x397   :  { %v641_v32 = vadd.f32 %v731_v27, %v640_v30  ;;  %v533_v33 = vpop.f32.mrb[10].mxu0  ;;  %v816_v34 = vpop.f32.mrb[5].mxu1 }
 0x398   :  { %v797_v35 = vpop.f32.mrb[11].mxu0  ;;  %v643_v36 = vpop.f32.mrb[6].mxu1  ;;  %v646_v40 = vmax.f32 %v531_v31, 0.0 }
 0x399   :  { %v647_v38 = vmax.f32 %v641_v32, 0.0  ;;  %v817_v39 = vpop.f32.mrb[7].mxu1 }
 0x39a   :  { %v653_v43 = vmul.f32 %v740_v42, %v646_v40 }
 0x39b   :  { %v667_v41 = vmul.f32 %v742_v37, %v647_v38 }
 0x39d   :  { %668 = vadd.xlane.f32.xlu1 %v667_v41 }
 0x3a1   :  { %654 = vadd.xlane.f32.xlu1 %v653_v43 }
 0x42a   :  { %v669_v46 = vpop.xlane.xlu1 %668 }
 0x42b   :  { %v670_v47 = vadd.f32 %v741_v45, %v669_v46 }
 0x42d   :  { %677 = vperm.xlu0 %830, %v670_v47  }
 0x42e   :  { %v655_v48 = vpop.xlane.xlu1 %654 }
 0x42f   :  { %v661_v49 = vadd.f32 %v741_v45, %v655_v48 }
 0x431   :  { %683 = vperm.xlu1 %831, %v661_v49   ;;  %832 = vset.pattern.permute.xlu0 %v985_v23 }
 0x4ac   :  { %v678_v51 = vpop.permute.xlu0 %677 }
 0x4ad   :  { %v680_v52 = vsel %vm674_vm4, %v678_v51, 0.0 }
 0x4b0   :  { %v684_v53 = vpop.permute.xlu1 %683 }
 0x4b1   :  { %v686_v54 = vsel %vm673_vm5, %v684_v53, %v680_v52 }
 0x4b2   :  { %687 = vst [vmem:[%s1185_s9] sm:$0xff] %v686_v54 }
 0x4b3   :  { %692 = vsyncpa [#allocation4], 1 }
 0x4b4   :  { %693 = vsyncpa [#allocation6], 1 }
 0x4b5   :  { %694 = vsyncpa [#allocation9], 1 }

</bundles_post_ra>
